<compile_context>
chip_gen: v7x
topology: tpu7x:2x2x1
jax: 0.10.0
libtpu: 0.0.40
codegen_flags: <defaults>
</compile_context>

<pallas_src>
import jax
import jax.numpy as jnp
from jax.experimental import pallas as pl
from jax.experimental.pallas import tpu as pltpu

EPS = 1e-5
_LANE = 128
_STAT_ROWS = 8  # sublane-aligned partial-stat rows per shard


def _round_up(x, m):
    return (x + m - 1) // m * m


def _cdiv(a, b):
    return -(-a // b)


def _vmem_limit_bytes():
    """Generation-aware scoped-VMEM limit (v7x has only 64 MiB physical)."""
    cap = 0
    try:
        cap = int(getattr(pltpu.get_tpu_info(), "vmem_capacity_bytes", 0) or 0)
    except Exception:
        cap = 0
    if cap <= 0:
        cap = 64 * 1024 * 1024  # assume the smallest generation if unknown
    return min((cap * 3) // 4, 100 * 1024 * 1024)


def _pick_tile(m_rows, per_row_bytes, fixed_bytes, budget_bytes):
    """Largest power-of-two row tile (>=128) whose VMEM footprint fits."""
    cap = max(_LANE, min(2048, _round_up(m_rows, _LANE)))
    tm = _LANE
    while tm * 2 <= cap and fixed_bytes + (tm * 2) * per_row_bytes <= budget_bytes:
        tm *= 2
    return tm


def _rowsum8(v):
    """Reduce rows of (R, C), R a power of two >= 8, down to (8, C) using
    sublane-aligned slice adds only (pure VPU; no cross-sublane XLU reduce)."""
    while v.shape[0] > _STAT_ROWS:
        half = v.shape[0] // 2
        v = v[:half, :] + v[half:, :]
    return v


# ---------------- Pass 1 kernels: conv matmul + batch statistics -------------
def _stats_kernel(p_ref, w_ref, sum_ref, sq_ref):
    """Per-channel sum / sum-of-squares of the conv output (y never stored)."""
    y = jnp.dot(p_ref[...], w_ref[...], preferred_element_type=jnp.float32)

    @pl.when(pl.program_id(1) == 0)
    def _():
        sum_ref[...] = jnp.zeros_like(sum_ref)
        sq_ref[...] = jnp.zeros_like(sq_ref)

    sum_ref[...] += _rowsum8(y)
    sq_ref[...] += _rowsum8(y * y)


def _conv_stats_kernel(p_ref, w_ref, y_ref, sum_ref, sq_ref):
    """Same as _stats_kernel but also writes y as bf16 (large-K path)."""
    y = jnp.dot(p_ref[...], w_ref[...], preferred_element_type=jnp.float32)

    @pl.when(pl.program_id(1) == 0)
    def _():
        sum_ref[...] = jnp.zeros_like(sum_ref)
        sq_ref[...] = jnp.zeros_like(sq_ref)

    sum_ref[...] += _rowsum8(y)
    sq_ref[...] += _rowsum8(y * y)
    y_ref[...] = y.astype(y_ref.dtype)


# ---------------- Pass 2 kernels: folded BN affine + ReLU --------------------
def _conv_bn_relu_kernel(p_ref, w_ref, scale_ref, shift_ref, o_ref):
    """Recompute conv on the MXU, then scale/shift + ReLU (small-K path)."""
    y = jnp.dot(p_ref[...], w_ref[...], preferred_element_type=jnp.float32)
    o_ref[...] = jnp.maximum(y * scale_ref[...] + shift_ref[...],
                             0.0).astype(o_ref.dtype)


def _bn_relu_kernel(y_ref, scale_ref, shift_ref, o_ref):
    """Affine + ReLU on precomputed bf16 y; math kept in f32 (v5e-safe)."""
    y = y_ref[...].astype(jnp.float32)
    o_ref[...] = jnp.maximum(y * scale_ref[...] + shift_ref[...],
                             0.0).astype(o_ref.dtype)


def _downsample_impl(x_nchw, weight, bias, gamma, beta):
    del bias  # cancelled exactly by training-mode BN mean subtraction
    N, Cin, H, W = x_nchw.shape
    Cout = weight.shape[0]
    OH = (H + 2 - 3) // 2 + 1
    OW = (W + 2 - 3) // 2 + 1
    M = N * OH * OW
    K = 9 * Cin
    Cp = _round_up(Cout, _LANE)

    vmem_limit = _vmem_limit_bytes()
    budget = (vmem_limit * 4) // 5  # headroom for compiler temporaries

    # Small K relative to padded channels -> recomputing the conv in pass 2 is
    # cheaper than a full HBM round trip of y.
    recompute = K <= 2 * Cp

    # ---- tile plans (explicit VMEM byte accounting) --------------------------
    # pass 1 per row: 2x bf16 patch buffers + f32 temps (y, y*y) [+ 2x bf16 y out]
    p1_per_row = 4 * K + 8 * Cp + (0 if recompute else 4 * Cp)
    p1_fixed = 2 * (K * Cp * 2) + 2 * 2 * (_STAT_ROWS * Cp * 4)
    TM1 = _pick_tile(M, p1_per_row, p1_fixed, budget)
    if recompute:
        p2_per_row = 4 * K + 12 * Cp          # patches(bf16,x2) + out(f32,x2) + temp
        p2_fixed = 2 * (K * Cp * 2)
    else:
        p2_per_row = 4 * Cp + 12 * Cp          # y(bf16,x2) + out(f32,x2) + temp
        p2_fixed = 0
    TM2 = _pick_tile(M, p2_per_row, p2_fixed, budget)
    # TODO(synk): tile over K when the 9*Cin x Cp weight block alone exceeds the
    # VMEM budget (very large Cin*Cout); also single-buffer the resident weight
    # block via pipeline_mode=pl.Buffered(1) once universally supported.

    tiles1 = _cdiv(M, TM1)
    n_shards = 2 if tiles1 >= 2 else 1   # v7x has 2 TensorCores; no-op elsewhere
    m_block = max(TM2, n_shards * TM1)   # powers of two -> mutual divisibility
    M_pad = _round_up(M, m_block)
    shard_tiles = M_pad // (n_shards * TM1)
    grid2 = M_pad // TM2

    # ---- glue: NCHW -> NHWC, pad, im2col (kh, kw, cin), bf16 -----------------
    x = jnp.transpose(x_nchw, (0, 2, 3, 1)).astype(jnp.float32)
    x_pad = jnp.pad(x, ((0, 0), (1, 1), (1, 1), (0, 0)))
    patch_list = []
    for kh in range(3):
        for kw in range(3):
            patch_list.append(
                x_pad[:, kh:kh + 2 * OH - 1:2, kw:kw + 2 * OW - 1:2, :])
    patches = jnp.concatenate(patch_list, axis=-1).reshape(M, K)
    patches = jnp.pad(patches, ((0, M_pad - M), (0, 0))).astype(jnp.bfloat16)
    # TODO(synk): for large Cin, fuse im2col into pass 1 (9 accumulating dots on
    # strided NHWC views) to avoid the 9x-expanded patch HBM round trip.

    # weight [Cout, Cin, 3, 3] -> [kh, kw, cin, cout] -> [K, Cp] (zero-padded)
    w_mat = jnp.transpose(weight.astype(jnp.float32), (2, 3, 1, 0)).reshape(K, Cout)
    w_mat = jnp.pad(w_mat, ((0, 0), (0, Cp - Cout))).astype(jnp.bfloat16)

    # ---- pass 1: conv matmul + per-channel sum / sum-of-squares --------------
    n_stat_rows = n_shards * _STAT_ROWS
    stats_shape = jax.ShapeDtypeStruct((n_stat_rows, Cp), jnp.float32)
    stat_spec = pl.BlockSpec((_STAT_ROWS, Cp), lambda c, i: (c, 0))
    p_spec1 = pl.BlockSpec((TM1, K), lambda c, i: (c * shard_tiles + i, 0))
    w_spec1 = pl.BlockSpec((K, Cp), lambda c, i: (0, 0))   # loaded once
    p1_params = pltpu.CompilerParams(
        dimension_semantics=("parallel", "arbitrary"),
        vmem_limit_bytes=vmem_limit)

    conv_flops = 2 * M_pad * K * Cp
    stat_bytes = 2 * n_stat_rows * Cp * 4

    if recompute:
        cost1 = pl.CostEstimate(
            flops=conv_flops, transcendentals=0,
            bytes_accessed=M_pad * K * 2 + K * Cp * 2 + stat_bytes)
        ch_sum, ch_sq = pl.pallas_call(
            _stats_kernel,
            out_shape=(stats_shape, stats_shape),
            grid_spec=pltpu.PrefetchScalarGridSpec(
                num_scalar_prefetch=0,
                grid=(n_shards, shard_tiles),
                in_specs=[p_spec1, w_spec1],
                out_specs=(stat_spec, stat_spec)),
            compiler_params=p1_params,
            cost_estimate=cost1,
        )(patches, w_mat)
        y_bf16 = None
    else:
        cost1 = pl.CostEstimate(
            flops=conv_flops, transcendentals=0,
            bytes_accessed=(M_pad * K * 2 + K * Cp * 2 + M_pad * Cp * 2
                            + stat_bytes))
        y_bf16, ch_sum, ch_sq = pl.pallas_call(
            _conv_stats_kernel,
            out_shape=(jax.ShapeDtypeStruct((M_pad, Cp), jnp.bfloat16),
                       stats_shape, stats_shape),
            grid_spec=pltpu.PrefetchScalarGridSpec(
                num_scalar_prefetch=0,
                grid=(n_shards, shard_tiles),
                in_specs=[p_spec1, w_spec1],
                out_specs=(pl.BlockSpec((TM1, Cp),
                                        lambda c, i: (c * shard_tiles + i, 0)),
                           stat_spec, stat_spec)),
            compiler_params=p1_params,
            cost_estimate=cost1,
        )(patches, w_mat)

    # ---- tiny glue: finalize BN and fold affine into (scale, shift) ----------
    m_f = jnp.float32(M)  # true row count; zero-padded rows add nothing
    ch_sum = jnp.sum(ch_sum, axis=0, keepdims=True)   # (1, Cp)
    ch_sq = jnp.sum(ch_sq, axis=0, keepdims=True)
    mean = ch_sum / m_f
    var = jnp.maximum(ch_sq / m_f - mean * mean, 0.0)  # guard E[x^2]-E[x]^2
    inv_std = jax.lax.rsqrt(var + EPS)
    g_row = jnp.pad(gamma.astype(jnp.float32).reshape(1, Cout),
                    ((0, 0), (0, Cp - Cout)))
    b_row = jnp.pad(beta.astype(jnp.float32).reshape(1, Cout),
                    ((0, 0), (0, Cp - Cout)))
    scale = g_row * inv_std
    shift = b_row - mean * scale

    # ---- pass 2: folded BN affine + ReLU --------------------------------------
    p2_params = pltpu.CompilerParams(
        dimension_semantics=("parallel",),
        vmem_limit_bytes=vmem_limit)
    out_shape2 = jax.ShapeDtypeStruct((M_pad, Cp), jnp.float32)
    affine_spec = pl.BlockSpec((1, Cp), lambda i: (0, 0))
    out_spec2 = pl.BlockSpec((TM2, Cp), lambda i: (i, 0))

    if recompute:
        cost2 = pl.CostEstimate(
            flops=conv_flops + 3 * M_pad * Cp, transcendentals=0,
            bytes_accessed=M_pad * K * 2 + K * Cp * 2 + M_pad * Cp * 4)
        out_flat = pl.pallas_call(
            _conv_bn_relu_kernel,
            out_shape=out_shape2,
            grid_spec=pltpu.PrefetchScalarGridSpec(
                num_scalar_prefetch=0,
                grid=(grid2,),
                in_specs=[pl.BlockSpec((TM2, K), lambda i: (i, 0)),
                          pl.BlockSpec((K, Cp), lambda i: (0, 0)),
                          affine_spec, affine_spec],
                out_specs=out_spec2),
            compiler_params=p2_params,
            cost_estimate=cost2,
        )(patches, w_mat, scale, shift)
    else:
        cost2 = pl.CostEstimate(
            flops=3 * M_pad * Cp, transcendentals=0,
            bytes_accessed=M_pad * Cp * 2 + M_pad * Cp * 4)
        out_flat = pl.pallas_call(
            _bn_relu_kernel,
            out_shape=out_shape2,
            grid_spec=pltpu.PrefetchScalarGridSpec(
                num_scalar_prefetch=0,
                grid=(grid2,),
                in_specs=[pl.BlockSpec((TM2, Cp), lambda i: (i, 0)),
                          affine_spec, affine_spec],
                out_specs=out_spec2),
            compiler_params=p2_params,
            cost_estimate=cost2,
        )(y_bf16, scale, shift)

    out = out_flat[:M, :Cout].reshape(N, OH, OW, Cout)
    return jnp.transpose(out, (0, 3, 1, 2))


downsample_unit_pallas = jax.jit(_downsample_impl)


def _reference(x, weight, bias, gamma, beta):
    """Pure-JAX f32 reference: conv(s=2,p=1)+bias, training-mode BN, ReLU."""
    y = jax.lax.conv_general_dilated(
        x.astype(jnp.float32), weight.astype(jnp.float32),
        window_strides=(2, 2), padding=((1, 1), (1, 1)),
        dimension_numbers=("NCHW", "OIHW", "NCHW"))
    y = y + bias.reshape(1, -1, 1, 1)
    mean = jnp.mean(y, axis=(0, 2, 3), keepdims=True)
    var = jnp.mean((y - mean) ** 2, axis=(0, 2, 3), keepdims=True)
    y = (y - mean) * jax.lax.rsqrt(var + EPS)
    y = y * gamma.reshape(1, -1, 1, 1) + beta.reshape(1, -1, 1, 1)
    return jnp.maximum(y, 0.0)


def _make_inputs(key, N, Cin, H, W, Cout):
    k_x, k_w, k_b, k_g, k_bt = jax.random.split(key, 5)
    x = jax.random.normal(k_x, (N, Cin, H, W), dtype=jnp.float32)
    weight = 0.1 * jax.random.normal(k_w, (Cout, Cin, 3, 3), dtype=jnp.float32)
    bias = 0.1 * jax.random.normal(k_b, (Cout,), dtype=jnp.float32)
    gamma = 1.0 + 0.1 * jax.random.normal(k_g, (Cout,), dtype=jnp.float32)
    beta = 0.1 * jax.random.normal(k_bt, (Cout,), dtype=jnp.float32)
    return x, weight, bias, gamma, beta


if __name__ == "__main__":
    # Case 1 (module's typical small shape): Cin=4 -> small-K recompute path,
    # the conv intermediate never touches HBM.
    x, weight, bias, gamma, beta = _make_inputs(jax.random.PRNGKey(0),
                                                N=2, Cin=4, H=16, W=16, Cout=8)
    out = jax.block_until_ready(
        downsample_unit_pallas(x, weight, bias, gamma, beta))
    assert out.shape == (2, 8, 8, 8)
    ref = _reference(x, weight, bias, gamma, beta)
    err = float(jnp.max(jnp.abs(out - ref)))
    assert err < 0.1, f"recompute path: max abs error vs reference {err}"

    # Case 2: larger Cin -> materialized bf16-y path (exercises both kernels).
    x, weight, bias, gamma, beta = _make_inputs(jax.random.PRNGKey(1),
                                                N=2, Cin=32, H=16, W=16, Cout=16)
    out = jax.block_until_ready(
        downsample_unit_pallas(x, weight, bias, gamma, beta))
    assert out.shape == (2, 16, 8, 8)
    ref = _reference(x, weight, bias, gamma, beta)
    err = float(jnp.max(jnp.abs(out - ref)))
    assert err < 0.1, f"bf16-y path: max abs error vs reference {err}"

    print("KERNEL_OK")
</pallas_src>

<mosaic_0001>
module attributes {stable_mosaic.version = 11 : i64} {
  func.func @_conv_bn_relu_kernel(%arg0: i32, %arg1: memref<128x36xbf16, #tpu.memory_space<vmem>>, %arg2: memref<36x128xbf16, #tpu.memory_space<vmem>>, %arg3: memref<1x128xf32, #tpu.memory_space<vmem>>, %arg4: memref<1x128xf32, #tpu.memory_space<vmem>>, %arg5: memref<128x128xf32, #tpu.memory_space<vmem>>) attributes {dimension_semantics = [#tpu.dimension_semantics<parallel>], iteration_bounds = array<i64: 1>, scalar_prefetch = 0 : i64, scratch_operands = 0 : i64, tpu.core_type = #tpu.core_type<tc>, window_params = [{transform_indices = @transform_0, window_bounds = array<i64: 128, 36>}, {pipeline_mode = #tpu.pipeline_mode<synchronous>, transform_indices = @transform_1, window_bounds = array<i64: 36, 128>}, {pipeline_mode = #tpu.pipeline_mode<synchronous>, transform_indices = @transform_2, window_bounds = array<i64: 1, 128>}, {pipeline_mode = #tpu.pipeline_mode<synchronous>, transform_indices = @transform_3, window_bounds = array<i64: 1, 128>}, {transform_indices = @transform_4, window_bounds = array<i64: 128, 128>}]} {
    %c0 = arith.constant 0 : index
    %c0_0 = arith.constant 0 : index
    %0 = vector.load %arg1[%c0, %c0_0] : memref<128x36xbf16, #tpu.memory_space<vmem>>, vector<128x36xbf16>
    %c0_1 = arith.constant 0 : index
    %c0_2 = arith.constant 0 : index
    %1 = vector.load %arg2[%c0_1, %c0_2] : memref<36x128xbf16, #tpu.memory_space<vmem>>, vector<36x128xbf16>
    %cst = arith.constant dense<0.000000e+00> : vector<128x128xf32>
    %2 = tpu.matmul %0, %1, %cst {dimension_numbers = #tpu.dot_dimension_numbers<[1], [0], [0], [1], [0, 0, 1, 1], [], []>} : vector<128x36xbf16>, vector<36x128xbf16>, vector<128x128xf32> -> vector<128x128xf32>
    %c0_3 = arith.constant 0 : index
    %c0_4 = arith.constant 0 : index
    %3 = vector.load %arg3[%c0_3, %c0_4] : memref<1x128xf32, #tpu.memory_space<vmem>>, vector<1x128xf32>
    %4 = vector.broadcast %3 : vector<1x128xf32> to vector<128x128xf32>
    %5 = arith.mulf %2, %4 : vector<128x128xf32>
    %c0_5 = arith.constant 0 : index
    %c0_6 = arith.constant 0 : index
    %6 = vector.load %arg4[%c0_5, %c0_6] : memref<1x128xf32, #tpu.memory_space<vmem>>, vector<1x128xf32>
    %7 = vector.broadcast %6 : vector<1x128xf32> to vector<128x128xf32>
    %8 = arith.addf %5, %7 : vector<128x128xf32>
    %cst_7 = arith.constant 0.000000e+00 : f32
    %9 = vector.broadcast %cst_7 : f32 to vector<128x128xf32>
    %10 = arith.maximumf %8, %9 : vector<128x128xf32>
    %c0_8 = arith.constant 0 : index
    %c0_9 = arith.constant 0 : index
    %11 = vector.load %arg5[%c0_8, %c0_9] : memref<128x128xf32, #tpu.memory_space<vmem>>, vector<128x128xf32>
    tpu.vector_store %arg5[%c0_8, %c0_9], %10 {strides = array<i32>} : memref<128x128xf32, #tpu.memory_space<vmem>>, vector<128x128xf32>,
    return
  }
  func.func @transform_0(%arg0: i32) -> (i32, i32) {
    %c0_i32 = arith.constant 0 : i32
    %c0_i32_0 = arith.constant 0 : i32
    return %arg0, %c0_i32 : i32, i32
  }
  func.func @transform_1(%arg0: i32) -> (i32, i32) {
    %c0_i32 = arith.constant 0 : i32
    %c0_i32_0 = arith.constant 0 : i32
    %c0_i32_1 = arith.constant 0 : i32
    return %c0_i32, %c0_i32_0 : i32, i32
  }
  func.func @transform_2(%arg0: i32) -> (i32, i32) {
    %c0_i32 = arith.constant 0 : i32
    %c0_i32_0 = arith.constant 0 : i32
    %c0_i32_1 = arith.constant 0 : i32
    return %c0_i32, %c0_i32_0 : i32, i32
  }
  func.func @transform_3(%arg0: i32) -> (i32, i32) {
    %c0_i32 = arith.constant 0 : i32
    %c0_i32_0 = arith.constant 0 : i32
    %c0_i32_1 = arith.constant 0 : i32
    return %c0_i32, %c0_i32_0 : i32, i32
  }
  func.func @transform_4(%arg0: i32) -> (i32, i32) {
    %c0_i32 = arith.constant 0 : i32
    %c0_i32_0 = arith.constant 0 : i32
    return %arg0, %c0_i32 : i32, i32
  }
}

module attributes {stable_mosaic.version = 11 : i64} {
  func.func @_stats_kernel(%arg0: i32, %arg1: i32, %arg2: memref<128x36xbf16, #tpu.memory_space<vmem>>, %arg3: memref<36x128xbf16, #tpu.memory_space<vmem>>, %arg4: memref<8x128xf32, #tpu.memory_space<vmem>>, %arg5: memref<8x128xf32, #tpu.memory_space<vmem>>) attributes {dimension_semantics = [#tpu.dimension_semantics<parallel>, #tpu.dimension_semantics<arbitrary>], iteration_bounds = array<i64: 1, 1>, scalar_prefetch = 0 : i64, scratch_operands = 0 : i64, tpu.core_type = #tpu.core_type<tc>, window_params = [{transform_indices = @transform_0, window_bounds = array<i64: 128, 36>}, {pipeline_mode = #tpu.pipeline_mode<synchronous>, transform_indices = @transform_1, window_bounds = array<i64: 36, 128>}, {transform_indices = @transform_2, window_bounds = array<i64: 8, 128>}, {transform_indices = @transform_3, window_bounds = array<i64: 8, 128>}]} {
    %c0 = arith.constant 0 : index
    %c0_0 = arith.constant 0 : index
    %0 = vector.load %arg2[%c0, %c0_0] : memref<128x36xbf16, #tpu.memory_space<vmem>>, vector<128x36xbf16>
    %c0_1 = arith.constant 0 : index
    %c0_2 = arith.constant 0 : index
    %1 = vector.load %arg3[%c0_1, %c0_2] : memref<36x128xbf16, #tpu.memory_space<vmem>>, vector<36x128xbf16>
    %cst = arith.constant dense<0.000000e+00> : vector<128x128xf32>
    %2 = tpu.matmul %0, %1, %cst {dimension_numbers = #tpu.dot_dimension_numbers<[1], [0], [0], [1], [0, 0, 1, 1], [], []>} : vector<128x36xbf16>, vector<36x128xbf16>, vector<128x128xf32> -> vector<128x128xf32>
    %c0_i32 = arith.constant 0 : i32
    %3 = arith.cmpi eq, %arg1, %c0_i32 : i32
    %4 = arith.extui %3 : i1 to i32
    %c0_i32_3 = arith.constant 0 : i32
    %5 = arith.cmpi ne, %4, %c0_i32_3 : i32
    scf.if %5 {
      %cst_12 = arith.constant 0.000000e+00 : f32
      %37 = vector.broadcast %cst_12 : f32 to vector<8x128xf32>
      %c0_13 = arith.constant 0 : index
      %c0_14 = arith.constant 0 : index
      %38 = vector.load %arg4[%c0_13, %c0_14] : memref<8x128xf32, #tpu.memory_space<vmem>>, vector<8x128xf32>
      tpu.vector_store %arg4[%c0_13, %c0_14], %37 {strides = array<i32>} : memref<8x128xf32, #tpu.memory_space<vmem>>, vector<8x128xf32>,
      %cst_15 = arith.constant 0.000000e+00 : f32
      %39 = vector.broadcast %cst_15 : f32 to vector<8x128xf32>
      %c0_16 = arith.constant 0 : index
      %c0_17 = arith.constant 0 : index
      %40 = vector.load %arg5[%c0_16, %c0_17] : memref<8x128xf32, #tpu.memory_space<vmem>>, vector<8x128xf32>
      tpu.vector_store %arg5[%c0_16, %c0_17], %39 {strides = array<i32>} : memref<8x128xf32, #tpu.memory_space<vmem>>, vector<8x128xf32>,
    } else {
    }
    %c0_4 = arith.constant 0 : index
    %c0_5 = arith.constant 0 : index
    %6 = vector.load %arg4[%c0_4, %c0_5] : memref<8x128xf32, #tpu.memory_space<vmem>>, vector<8x128xf32>
    %7 = vector.extract_strided_slice %2 {offsets = [0, 0], sizes = [64, 128], strides = [1, 1]} : vector<128x128xf32> to vector<64x128xf32>
    %8 = vector.extract_strided_slice %2 {offsets = [64, 0], sizes = [64, 128], strides = [1, 1]} : vector<128x128xf32> to vector<64x128xf32>
    %9 = arith.addf %7, %8 : vector<64x128xf32>
    %10 = vector.extract_strided_slice %9 {offsets = [0, 0], sizes = [32, 128], strides = [1, 1]} : vector<64x128xf32> to vector<32x128xf32>
    %11 = vector.extract_strided_slice %9 {offsets = [32, 0], sizes = [32, 128], strides = [1, 1]} : vector<64x128xf32> to vector<32x128xf32>
    %12 = arith.addf %10, %11 : vector<32x128xf32>
    %13 = vector.extract_strided_slice %12 {offsets = [0, 0], sizes = [16, 128], strides = [1, 1]} : vector<32x128xf32> to vector<16x128xf32>
    %14 = vector.extract_strided_slice %12 {offsets = [16, 0], sizes = [16, 128], strides = [1, 1]} : vector<32x128xf32> to vector<16x128xf32>
    %15 = arith.addf %13, %14 : vector<16x128xf32>
    %16 = vector.extract_strided_slice %15 {offsets = [0, 0], sizes = [8, 128], strides = [1, 1]} : vector<16x128xf32> to vector<8x128xf32>
    %17 = vector.extract_strided_slice %15 {offsets = [8, 0], sizes = [8, 128], strides = [1, 1]} : vector<16x128xf32> to vector<8x128xf32>
    %18 = arith.addf %16, %17 : vector<8x128xf32>
    %19 = arith.addf %6, %18 : vector<8x128xf32>
    %c0_6 = arith.constant 0 : index
    %c0_7 = arith.constant 0 : index
    %20 = vector.load %arg4[%c0_6, %c0_7] : memref<8x128xf32, #tpu.memory_space<vmem>>, vector<8x128xf32>
    tpu.vector_store %arg4[%c0_6, %c0_7], %19 {strides = array<i32>} : memref<8x128xf32, #tpu.memory_space<vmem>>, vector<8x128xf32>,
    %c0_8 = arith.constant 0 : index
    %c0_9 = arith.constant 0 : index
    %21 = vector.load %arg5[%c0_8, %c0_9] : memref<8x128xf32, #tpu.memory_space<vmem>>, vector<8x128xf32>
    %22 = arith.mulf %2, %2 : vector<128x128xf32>
    %23 = vector.extract_strided_slice %22 {offsets = [0, 0], sizes = [64, 128], strides = [1, 1]} : vector<128x128xf32> to vector<64x128xf32>
    %24 = vector.extract_strided_slice %22 {offsets = [64, 0], sizes = [64, 128], strides = [1, 1]} : vector<128x128xf32> to vector<64x128xf32>
    %25 = arith.addf %23, %24 : vector<64x128xf32>
    %26 = vector.extract_strided_slice %25 {offsets = [0, 0], sizes = [32, 128], strides = [1, 1]} : vector<64x128xf32> to vector<32x128xf32>
    %27 = vector.extract_strided_slice %25 {offsets = [32, 0], sizes = [32, 128], strides = [1, 1]} : vector<64x128xf32> to vector<32x128xf32>
    %28 = arith.addf %26, %27 : vector<32x128xf32>
    %29 = vector.extract_strided_slice %28 {offsets = [0, 0], sizes = [16, 128], strides = [1, 1]} : vector<32x128xf32> to vector<16x128xf32>
    %30 = vector.extract_strided_slice %28 {offsets = [16, 0], sizes = [16, 128], strides = [1, 1]} : vector<32x128xf32> to vector<16x128xf32>
    %31 = arith.addf %29, %30 : vector<16x128xf32>
    %32 = vector.extract_strided_slice %31 {offsets = [0, 0], sizes = [8, 128], strides = [1, 1]} : vector<16x128xf32> to vector<8x128xf32>
    %33 = vector.extract_strided_slice %31 {offsets = [8, 0], sizes = [8, 128], strides = [1, 1]} : vector<16x128xf32> to vector<8x128xf32>
    %34 = arith.addf %32, %33 : vector<8x128xf32>
    %35 = arith.addf %21, %34 : vector<8x128xf32>
    %c0_10 = arith.constant 0 : index
    %c0_11 = arith.constant 0 : index
    %36 = vector.load %arg5[%c0_10, %c0_11] : memref<8x128xf32, #tpu.memory_space<vmem>>, vector<8x128xf32>
    tpu.vector_store %arg5[%c0_10, %c0_11], %35 {strides = array<i32>} : memref<8x128xf32, #tpu.memory_space<vmem>>, vector<8x128xf32>,
    return
  }
  func.func @transform_0(%arg0: i32, %arg1: i32) -> (i32, i32) {
    %c1_i32 = arith.constant 1 : i32
    %0 = arith.muli %arg0, %c1_i32 : i32
    %1 = arith.addi %0, %arg1 : i32
    %c0_i32 = arith.constant 0 : i32
    %c0_i32_0 = arith.constant 0 : i32
    return %1, %c0_i32 : i32, i32
  }
  func.func @transform_1(%arg0: i32, %arg1: i32) -> (i32, i32) {
    %c0_i32 = arith.constant 0 : i32
    %c0_i32_0 = arith.constant 0 : i32
    %c0_i32_1 = arith.constant 0 : i32
    return %c0_i32, %c0_i32_0 : i32, i32
  }
  func.func @transform_2(%arg0: i32, %arg1: i32) -> (i32, i32) {
    %c0_i32 = arith.constant 0 : i32
    %c0_i32_0 = arith.constant 0 : i32
    return %arg0, %c0_i32 : i32, i32
  }
  func.func @transform_3(%arg0: i32, %arg1: i32) -> (i32, i32) {
    %c0_i32 = arith.constant 0 : i32
    %c0_i32_0 = arith.constant 0 : i32
    return %arg0, %c0_i32 : i32, i32
  }
}

</mosaic_0001>

<bundles_post_ra>
// kernel: _downsample_impl.3
= control target key start
LH: loop header
LB: loop body
LE: loop exit
PB: predicated region body
PF: predicated region fallthrough
CT: control target
= control target key end

     0   :  { %vm94_vm0 = vcmask 293888   ;;  %vm119_vm1 = vcmask 1041408   ;;  %s513_s1 = inlined_call_operand.vmem [shape: bf16[36,128], index: 1, kind: input, shape index: {}]   ;;  %s514_s0 = inlined_call_operand.vmem [shape: bf16[128,36], index: 0, kind: input, shape index: {}]   ;;  %s515_s2 = inlined_call_operand.vmem [shape: f32[1,128], index: 2, kind: input, shape index: {}]   ;;  %s516_s3 = inlined_call_operand.vmem [shape: f32[1,128], index: 3, kind: input, shape index: {}]   ;;  %s517_s4 = inlined_call_operand.vmem [shape: f32[128,128], index: 4, kind: output, shape index: {}]  }
   0x1   :  { %v364_v0 = vld [vmem:[%s513_s1] sm:$0xff]   ;;  %v365_v1 = vld [vmem:[%s513_s1 + $0x8] sm:$0xff]   ;;  %v366_v2 = vld [vmem:[%s513_s1 + $0x10] ss:$0 sps:$4 sm:$0x33]  }
   0x2   :  { %334 = vmatprep.subr.bf16.mxu0 %v364_v0  ;;  %356 = vmatprep.subr.bf16.mxu1 %v364_v0  ;;  %v367_v3 = vld [vmem:[%s514_s0] sm:$0xff]   ;;  %v121_v5 = vsel %vm119_vm1, %v366_v2, 0  ;;  %v369_v6 = vld [vmem:[%s514_s0 + $0x8] sm:$0xff]   ;;  %v371_v8 = vld [vmem:[%s514_s0 + $0x10] sm:$0xff]  }
   0x3   :  { %335 = vmatpush3.bf16.msra.mxu0 %v364_v0  ;;  %359 = vmatpush3.bf16.msra.mxu1 %v364_v0  ;;  %v368_v4 = vld [vmem:[%s514_s0 + $0x20] sm:$0xff]   ;;  %v370_v7 = vld [vmem:[%s514_s0 + $0x28] sm:$0xff]   ;;  %v372_v9 = vld [vmem:[%s514_s0 + $0x30] sm:$0xff]  }
   0x4   :  { %336 = vmatprep.subr.bf16.mxu0 %v365_v1  ;;  %357 = vmatprep.subr.bf16.mxu1 %v365_v1  ;;  %v373_v10 = vld [vmem:[%s514_s0 + $0x18] sm:$0xff]   ;;  %v321_v12 = vld [vmem:[%s515_s2] ss:$0 sm:$0xff] }
   0x5   :  { %340 = vmatprep.mubr.msk.bf16.mxu0 %vm94_vm0, %v367_v3  ;;  %348 = vmatprep.mubr.msk.bf16.mxu1 %vm94_vm0, %v368_v4  ;;  %v374_v11 = vld [vmem:[%s514_s0 + $0x38] sm:$0xff]   ;;  %v447_v14 = vld [vmem:[%s516_s3] ss:$0 sm:$0xff] }
   0x7   :  { %337 = vmatpush3.bf16.msra.mxu0 %v365_v1  ;;  %360 = vmatpush3.bf16.msra.mxu1 %v365_v1 }
   0x8   :  { %362 = vmatprep.subr.msk.bf16.mxu0 %vm119_vm1, %v366_v2  ;;  %363 = vmatprep.subr.msk.bf16.mxu1 %vm119_vm1, %v366_v2 }
   0xb   :  { %339 = vmatpush3.bf16.msra.mxu0 %v121_v5  ;;  %361 = vmatpush3.bf16.msra.mxu1 %v121_v5 }
   0xe   :  { %341 = vmatmul.mubr.msk.bf16.vlgmr.msra.gmra.mrb[0].mxu0 %vm94_vm0, %v369_v6  ;;  %349 = vmatmul.mubr.msk.bf16.vlgmr.msra.gmra.mrb[0].mxu1 %vm94_vm0, %v370_v7 }
   0xf   :  { %344 = vmatprep.mubr.msk.bf16.mxu0 %vm94_vm0, %v371_v8  ;;  %352 = vmatprep.mubr.msk.bf16.mxu1 %vm94_vm0, %v372_v9 }
  0x16   :  { %345 = vmatmul.mubr.msk.bf16.gmra.mrb[4].mxu0 %vm94_vm0, %v373_v10  ;;  %353 = vmatmul.mubr.msk.bf16.gmra.mrb[4].mxu1 %vm94_vm0, %v374_v11 }
  0xe1   :  { %v342_v13 = vpop.f32.mrb[0].mxu0  ;;  %v350_v15 = vpop.f32.mrb[0].mxu1 }
  0xe2   :  { %v229_v16 = vmul.f32 %v342_v13, %v321_v12  ;;  %v237_v17 = vmul.f32 %v350_v15, %v321_v12  ;;  %v157_v18 = vpop.f32.mrb[1].mxu0  ;;  %v189_v19 = vpop.f32.mrb[1].mxu1 }
  0xe3   :  { %v227_v20 = vmul.f32 %v321_v12, %v157_v18  ;;  %v235_v21 = vmul.f32 %v321_v12, %v189_v19  ;;  %v343_v22 = vpop.f32.mrb[2].mxu0  ;;  %v351_v23 = vpop.f32.mrb[2].mxu1 }
  0xe4   :  { %v252_v24 = vadd.f32 %v447_v14, %v229_v16  ;;  %v260_v25 = vadd.f32 %v447_v14, %v237_v17  ;;  %v230_v26 = vmul.f32 %v343_v22, %v321_v12  ;;  %v238_v27 = vmul.f32 %v351_v23, %v321_v12  ;;  %v160_v28 = vpop.f32.mrb[3].mxu0  ;;  %v192_v29 = vpop.f32.mrb[3].mxu1 }
  0xe5   :  { %v250_v30 = vadd.f32 %v447_v14, %v227_v20  ;;  %v258_v31 = vadd.f32 %v447_v14, %v235_v21  ;;  %v228_v32 = vmul.f32 %v321_v12, %v160_v28  ;;  %v236_v33 = vmul.f32 %v321_v12, %v192_v29 }
  0xe6   :  { %v268_v34 = vmax.f32 %v252_v24, 0.0  ;;  %v276_v35 = vmax.f32 %v260_v25, 0.0  ;;  %v253_v36 = vadd.f32 %v447_v14, %v230_v26  ;;  %v261_v37 = vadd.f32 %v447_v14, %v238_v27 }
  0xe7   :  { %v266_v38 = vmax.f32 %v250_v30, 0.0  ;;  %v274_v39 = vmax.f32 %v258_v31, 0.0  ;;  %v251_v40 = vadd.f32 %v447_v14, %v228_v32  ;;  %v259_v41 = vadd.f32 %v447_v14, %v236_v33 }
  0xe8   :  { %284 = vst [vmem:[%s517_s4 + $0x10] sm:$0xff] %v268_v34  ;;  %292 = vst [vmem:[%s517_s4 + $0x50] sm:$0xff] %v276_v35  ;;  %v269_v42 = vmax.f32 %v253_v36, 0.0  ;;  %v277_v43 = vmax.f32 %v261_v37, 0.0 }
  0xe9   :  { %282 = vst [vmem:[%s517_s4] sm:$0xff] %v266_v38  ;;  %290 = vst [vmem:[%s517_s4 + $0x40] sm:$0xff] %v274_v39  ;;  %v267_v44 = vmax.f32 %v251_v40, 0.0  ;;  %v275_v45 = vmax.f32 %v259_v41, 0.0  ;;  %v346_v46 = vpop.f32.mrb[4].mxu0  ;;  %v354_v47 = vpop.f32.mrb[4].mxu1 }
  0xea   :  { %285 = vst [vmem:[%s517_s4 + $0x18] sm:$0xff] %v269_v42  ;;  %293 = vst [vmem:[%s517_s4 + $0x58] sm:$0xff] %v277_v43  ;;  %v233_v48 = vmul.f32 %v346_v46, %v321_v12  ;;  %v241_v49 = vmul.f32 %v354_v47, %v321_v12  ;;  %v173_v50 = vpop.f32.mrb[5].mxu0  ;;  %v205_v51 = vpop.f32.mrb[5].mxu1 }
  0xeb   :  { %283 = vst [vmem:[%s517_s4 + $0x8] sm:$0xff] %v267_v44  ;;  %291 = vst [vmem:[%s517_s4 + $0x48] sm:$0xff] %v275_v45  ;;  %v231_v52 = vmul.f32 %v321_v12, %v173_v50  ;;  %v239_v53 = vmul.f32 %v321_v12, %v205_v51  ;;  %v347_v54 = vpop.f32.mrb[6].mxu0  ;;  %v355_v55 = vpop.f32.mrb[6].mxu1 }
  0xec   :  { %v256_v56 = vadd.f32 %v447_v14, %v233_v48  ;;  %v264_v57 = vadd.f32 %v447_v14, %v241_v49  ;;  %v234_v58 = vmul.f32 %v347_v54, %v321_v12  ;;  %v242_v59 = vmul.f32 %v355_v55, %v321_v12  ;;  %v176_v60 = vpop.f32.mrb[7].mxu0  ;;  %v208_v61 = vpop.f32.mrb[7].mxu1 }
  0xed   :  { %v254_v62 = vadd.f32 %v447_v14, %v231_v52  ;;  %v262_v63 = vadd.f32 %v447_v14, %v239_v53  ;;  %v232_v0 = vmul.f32 %v321_v12, %v176_v60  ;;  %v240_v1 = vmul.f32 %v321_v12, %v208_v61 }
  0xee   :  { %v272_v2 = vmax.f32 %v256_v56, 0.0  ;;  %v280_v3 = vmax.f32 %v264_v57, 0.0  ;;  %v257_v4 = vadd.f32 %v447_v14, %v234_v58  ;;  %v265_v5 = vadd.f32 %v447_v14, %v242_v59 }
  0xef   :  { %v270_v6 = vmax.f32 %v254_v62, 0.0  ;;  %v278_v7 = vmax.f32 %v262_v63, 0.0  ;;  %v255_v8 = vadd.f32 %v447_v14, %v232_v0  ;;  %v263_v9 = vadd.f32 %v447_v14, %v240_v1 }
  0xf0   :  { %288 = vst [vmem:[%s517_s4 + $0x30] sm:$0xff] %v272_v2  ;;  %296 = vst [vmem:[%s517_s4 + $0x70] sm:$0xff] %v280_v3  ;;  %v273_v10 = vmax.f32 %v257_v4, 0.0  ;;  %v281_v11 = vmax.f32 %v265_v5, 0.0 }
  0xf1   :  { %286 = vst [vmem:[%s517_s4 + $0x20] sm:$0xff] %v270_v6  ;;  %294 = vst [vmem:[%s517_s4 + $0x60] sm:$0xff] %v278_v7  ;;  %v271_v12 = vmax.f32 %v255_v8, 0.0  ;;  %v279_v13 = vmax.f32 %v263_v9, 0.0 }
  0xf2   :  { %289 = vst [vmem:[%s517_s4 + $0x38] sm:$0xff] %v273_v10  ;;  %297 = vst [vmem:[%s517_s4 + $0x78] sm:$0xff] %v281_v11 }
  0xf3   :  { %287 = vst [vmem:[%s517_s4 + $0x28] sm:$0xff] %v271_v12  ;;  %295 = vst [vmem:[%s517_s4 + $0x68] sm:$0xff] %v279_v13 }

// kernel: _downsample_impl.2
= control target key start
LH: loop header
LB: loop body
LE: loop exit
PB: predicated region body
PF: predicated region fallthrough
CT: control target
= control target key end

     0   :  { %vm112_vm0 = vcmask 293888   ;;  %vm137_vm1 = vcmask 1041408   ;;  %s449_s1 = inlined_call_operand.vmem [shape: bf16[36,128], index: 1, kind: input, shape index: {}]   ;;  %s450_s0 = inlined_call_operand.vmem [shape: bf16[128,36], index: 0, kind: input, shape index: {}]   ;;  %s451_s2 = inlined_call_operand.vmem [shape: f32[8,128], index: 2, kind: output, shape index: {0}]   ;;  %s452_s3 = inlined_call_operand.vmem [shape: f32[8,128], index: 3, kind: output, shape index: {1}]  }
   0x1   :  { %v371_v0 = vld [vmem:[%s449_s1] sm:$0xff]   ;;  %v372_v1 = vld [vmem:[%s449_s1 + $0x8] sm:$0xff]   ;;  %v373_v2 = vld [vmem:[%s449_s1 + $0x10] ss:$0 sps:$4 sm:$0x33]  }
   0x2   :  { %340 = vmatprep.subr.bf16.mxu0 %v371_v0  ;;  %362 = vmatprep.subr.bf16.mxu1 %v371_v0  ;;  %v374_v3 = vld [vmem:[%s450_s0] sm:$0xff]   ;;  %v139_v5 = vsel %vm137_vm1, %v373_v2, 0  ;;  %v376_v6 = vld [vmem:[%s450_s0 + $0x8] sm:$0xff]   ;;  %v378_v8 = vld [vmem:[%s450_s0 + $0x10] sm:$0xff]  }
   0x3   :  { %341 = vmatpush3.bf16.msra.mxu0 %v371_v0  ;;  %365 = vmatpush3.bf16.msra.mxu1 %v371_v0  ;;  %v375_v4 = vld [vmem:[%s450_s0 + $0x20] sm:$0xff]   ;;  %v377_v7 = vld [vmem:[%s450_s0 + $0x28] sm:$0xff]   ;;  %v379_v9 = vld [vmem:[%s450_s0 + $0x30] sm:$0xff]  }
   0x4   :  { %342 = vmatprep.subr.bf16.mxu0 %v372_v1  ;;  %363 = vmatprep.subr.bf16.mxu1 %v372_v1  ;;  %v380_v10 = vld [vmem:[%s450_s0 + $0x18] sm:$0xff]  }
   0x5   :  { %346 = vmatprep.mubr.msk.bf16.mxu0 %vm112_vm0, %v374_v3  ;;  %354 = vmatprep.mubr.msk.bf16.mxu1 %vm112_vm0, %v375_v4  ;;  %v381_v11 = vld [vmem:[%s450_s0 + $0x38] sm:$0xff]  }
   0x7   :  { %343 = vmatpush3.bf16.msra.mxu0 %v372_v1  ;;  %366 = vmatpush3.bf16.msra.mxu1 %v372_v1 }
   0x8   :  { %368 = vmatprep.subr.msk.bf16.mxu0 %vm137_vm1, %v373_v2  ;;  %369 = vmatprep.subr.msk.bf16.mxu1 %vm137_vm1, %v373_v2 }
   0xb   :  { %345 = vmatpush3.bf16.msra.mxu0 %v139_v5  ;;  %367 = vmatpush3.bf16.msra.mxu1 %v139_v5 }
   0xe   :  { %347 = vmatmul.mubr.msk.bf16.vlgmr.msra.gmra.mrb[0].mxu0 %vm112_vm0, %v376_v6  ;;  %355 = vmatmul.mubr.msk.bf16.vlgmr.msra.gmra.mrb[0].mxu1 %vm112_vm0, %v377_v7 }
   0xf   :  { %350 = vmatprep.mubr.msk.bf16.mxu0 %vm112_vm0, %v378_v8  ;;  %358 = vmatprep.mubr.msk.bf16.mxu1 %vm112_vm0, %v379_v9 }
  0x16   :  { %351 = vmatmul.mubr.msk.bf16.gmra.mrb[4].mxu0 %vm112_vm0, %v380_v10  ;;  %359 = vmatmul.mubr.msk.bf16.gmra.mrb[4].mxu1 %vm112_vm0, %v381_v11 }
  0xe1   :  { %v348_v12 = vpop.f32.mrb[0].mxu0  ;;  %v356_v13 = vpop.f32.mrb[0].mxu1 }
  0xe2   :  { %v265_v14 = vmul.f32 %v348_v12, %v348_v12  ;;  %v247_v15 = vadd.f32 %v356_v13, %v348_v12  ;;  %v273_v16 = vmul.f32 %v356_v13, %v356_v13  ;;  %v175_v17 = vpop.f32.mrb[1].mxu0  ;;  %v207_v18 = vpop.f32.mrb[1].mxu1 }
  0xe3   :  { %v263_v19 = vmul.f32 %v175_v17, %v175_v17  ;;  %v245_v20 = vadd.f32 %v207_v18, %v175_v17  ;;  %v271_v21 = vmul.f32 %v207_v18, %v207_v18  ;;  %v349_v22 = vpop.f32.mrb[2].mxu0  ;;  %v357_v23 = vpop.f32.mrb[2].mxu1 }
  0xe4   :  { %v281_v24 = vadd.f32 %v273_v16, %v265_v14  ;;  %v266_v25 = vmul.f32 %v349_v22, %v349_v22  ;;  %v248_v26 = vadd.f32 %v357_v23, %v349_v22  ;;  %v274_v27 = vmul.f32 %v357_v23, %v357_v23  ;;  %v178_v28 = vpop.f32.mrb[3].mxu0  ;;  %v210_v29 = vpop.f32.mrb[3].mxu1 }
  0xe5   :  { %v279_v30 = vadd.f32 %v271_v21, %v263_v19  ;;  %v264_v31 = vmul.f32 %v178_v28, %v178_v28  ;;  %v246_v32 = vadd.f32 %v210_v29, %v178_v28  ;;  %v272_v33 = vmul.f32 %v210_v29, %v210_v29 }
  0xe6   :  { %v282_v34 = vadd.f32 %v274_v27, %v266_v25 }
  0xe7   :  { %v280_v35 = vadd.f32 %v272_v33, %v264_v31 }
  0xe9   :  { %v352_v36 = vpop.f32.mrb[4].mxu0  ;;  %v360_v37 = vpop.f32.mrb[4].mxu1 }
  0xea   :  { %v269_v38 = vmul.f32 %v352_v36, %v352_v36  ;;  %v251_v39 = vadd.f32 %v360_v37, %v352_v36  ;;  %v277_v40 = vmul.f32 %v360_v37, %v360_v37  ;;  %v191_v41 = vpop.f32.mrb[5].mxu0  ;;  %v223_v42 = vpop.f32.mrb[5].mxu1 }
  0xeb   :  { %v267_v43 = vmul.f32 %v191_v41, %v191_v41  ;;  %v249_v44 = vadd.f32 %v223_v42, %v191_v41  ;;  %v275_v45 = vmul.f32 %v223_v42, %v223_v42  ;;  %v353_v46 = vpop.f32.mrb[6].mxu0  ;;  %v361_v47 = vpop.f32.mrb[6].mxu1 }
  0xec   :  { %v255_v48 = vadd.f32 %v251_v39, %v247_v15  ;;  %v285_v49 = vadd.f32 %v277_v40, %v269_v38  ;;  %v270_v50 = vmul.f32 %v353_v46, %v353_v46  ;;  %v252_v51 = vadd.f32 %v361_v47, %v353_v46  ;;  %v194_v52 = vpop.f32.mrb[7].mxu0  ;;  %v226_v53 = vpop.f32.mrb[7].mxu1 }
  0xed   :  { %v253_v54 = vadd.f32 %v249_v44, %v245_v20  ;;  %v283_v55 = vadd.f32 %v275_v45, %v267_v43  ;;  %v278_v56 = vmul.f32 %v361_v47, %v361_v47  ;;  %v268_v57 = vmul.f32 %v194_v52, %v194_v52 }
  0xee   :  { %v289_v58 = vadd.f32 %v285_v49, %v281_v24  ;;  %v256_v59 = vadd.f32 %v252_v51, %v248_v26  ;;  %v250_v60 = vadd.f32 %v226_v53, %v194_v52  ;;  %v276_v61 = vmul.f32 %v226_v53, %v226_v53 }
  0xef   :  { %v257_v62 = vadd.f32 %v255_v48, %v253_v54  ;;  %v287_v63 = vadd.f32 %v283_v55, %v279_v30  ;;  %v286_v0 = vadd.f32 %v278_v56, %v270_v50 }
  0xf0   :  { %v254_v1 = vadd.f32 %v250_v60, %v246_v32  ;;  %v284_v2 = vadd.f32 %v276_v61, %v268_v57 }
  0xf1   :  { %v291_v3 = vadd.f32 %v289_v58, %v287_v63  ;;  %v290_v4 = vadd.f32 %v286_v0, %v282_v34 }
  0xf2   :  { %v258_v5 = vadd.f32 %v256_v59, %v254_v1  ;;  %v288_v6 = vadd.f32 %v284_v2, %v280_v35 }
  0xf4   :  { %v259_v7 = vadd.f32 %v258_v5, %v257_v62  ;;  %v292_v8 = vadd.f32 %v290_v4, %v288_v6 }
  0xf6   :  { %v293_v9 = vadd.f32 %v292_v8, %v291_v3  ;;  %261 = vst [vmem:[%s451_s2] sm:$0xff] %v259_v7 }
  0xf8   :  { %295 = vst [vmem:[%s452_s3] sm:$0xff] %v293_v9 }

</bundles_post_ra>
